<compile_context>
chip_gen: v5e
topology: v5e:2x2
jax: 0.10.0
libtpu: 0.0.40
codegen_flags: <defaults>
</compile_context>

<pallas_src>
import jax
import jax.numpy as jnp
from jax.experimental import pallas as pl
from jax.experimental.pallas import tpu as pltpu

LANES = 128
SUBLANES = 8
MAX_TILE_ROWS = 8192                 # 8192*128*4B = 4 MiB per f32 stream per buffer
MIN_PALLAS_ELEMS = 2048              # below this a fused XLA reduce beats the launch
VMEM_LIMIT_BYTES = 32 * 1024 * 1024  # safe on v5e/v6e (128 MiB) and v7x (64 MiB)


def _round_up(x, m):
    return ((x + m - 1) // m) * m


def _sublane_multiple(dtype):
    # (8,128) tiling for 4-byte dtypes, (16,128) for 2-byte, (32,128) for 1-byte.
    return max(8, 32 // jnp.dtype(dtype).itemsize)


def _bce_mean_ref(p, t):
    """Pure-jnp BCE (mean reduction) with PyTorch's -100 log clamp."""
    p = p.astype(jnp.float32)
    t = t.astype(jnp.float32)
    logp = jnp.maximum(jnp.log(p), -100.0)
    log1mp = jnp.maximum(jnp.log(1.0 - p), -100.0)
    return jnp.mean(-(t * logp + (1.0 - t) * log1mp))


def _bce_mean_pallas(p_slice, t_slice, *, max_tile_rows=MAX_TILE_ROWS):
    """BCE with mean reduction over one slice (arbitrary shape) via Pallas."""
    n = 1
    for d in p_slice.shape:
        n *= int(d)

    sub = max(_sublane_multiple(p_slice.dtype), _sublane_multiple(t_slice.dtype))
    rows = n // LANES

    # Small / ragged-lane fallback: a fused XLA elementwise+reduce is cheaper
    # than the pallas_call launch + pipeline prologue for tiny slices, and it
    # covers n % 128 != 0 without any host-side padding pass.
    if n < MIN_PALLAS_ELEMS or n % LANES != 0 or rows < sub:
        return _bce_mean_ref(p_slice, t_slice)

    # Lane-dense (rows, 128) view. No pad, no astype here (upcast in-kernel).
    p2 = p_slice.reshape(rows, LANES)
    t2 = t_slice.reshape(rows, LANES)

    # Row tiling: as big as VMEM allows, multiple of the sublane packing, and
    # never larger than the array's row extent (the last tile may be partial;
    # it is masked in-kernel).
    max_rows = max(sub, (max_tile_rows // sub) * sub)
    num_tiles = pl.cdiv(rows, max_rows)
    tile_rows = _round_up(pl.cdiv(rows, num_tiles), sub)
    tile_rows = min(tile_rows, (rows // sub) * sub)
    num_tiles = pl.cdiv(rows, tile_rows)

    # Two-way split over a leading "parallel" axis lets v7x's second TensorCore
    # take half the tiles. Only used when it divides evenly, so no grid step
    # ever maps to a fully out-of-bounds block.
    splits = 2 if (num_tiles >= 2 and num_tiles % 2 == 0) else 1
    tiles_per_split = num_tiles // splits

    needs_mask = (num_tiles * tile_rows) != rows

    def kernel(p_ref, t_ref, out_ref):
        s = pl.program_id(0)
        i = pl.program_id(1)

        @pl.when(i == 0)
        def _():
            out_ref[...] = jnp.zeros_like(out_ref)

        p = p_ref[...].astype(jnp.float32)
        t = t_ref[...].astype(jnp.float32)

        # PyTorch nn.BCELoss clamps the log terms at -100 (clamp BEFORE the
        # multiply so 0 * (-100) stays finite).
        logp = jnp.maximum(jnp.log(p), -100.0)
        log1mp = jnp.maximum(jnp.log(1.0 - p), -100.0)
        term = -(t * logp + (1.0 - t) * log1mp)

        if needs_mask:
            # Zero out the partial-boundary rows of the last tile (their VMEM
            # contents are unspecified). Cheap VPU select, hidden under the
            # memory bound.
            tile_idx = s * tiles_per_split + i
            row0 = tile_idx * tile_rows
            row_ids = row0 + jax.lax.broadcasted_iota(jnp.int32, term.shape, 0)
            term = jnp.where(row_ids < rows, term, 0.0)

        # Partial sum into an (8,128) resident block: pure VPU adds, no
        # per-step cross-lane XLU reduction and no masked (1,1) store.
        red = term.reshape(-1, SUBLANES, LANES).sum(axis=0)
        out_ref[...] += red[None]

    partials = pl.pallas_call(
        kernel,
        out_shape=jax.ShapeDtypeStruct((splits, SUBLANES, LANES), jnp.float32),
        grid_spec=pltpu.PrefetchScalarGridSpec(
            num_scalar_prefetch=0,
            grid=(splits, tiles_per_split),
            in_specs=[
                pl.BlockSpec((tile_rows, LANES),
                             lambda s, i: (s * tiles_per_split + i, 0)),
                pl.BlockSpec((tile_rows, LANES),
                             lambda s, i: (s * tiles_per_split + i, 0)),
            ],
            out_specs=pl.BlockSpec((1, SUBLANES, LANES),
                                   lambda s, i: (s, 0, 0)),
        ),
        compiler_params=pltpu.CompilerParams(
            dimension_semantics=("parallel", "arbitrary"),
            vmem_limit_bytes=VMEM_LIMIT_BYTES,
        ),
    )(p2, t2)

    # One tiny (<= 2*8*128 floats) cross-lane reduction + /n in the wrapper.
    return jnp.sum(partials) / jnp.float32(n)


def bceloss_forward(input_scale, target_scale):
    """Mirrors BCELOSS.forward exactly.

    In the original, losses.append is outside the loop, so only the LAST
    slice's BCE survives and total_loss == BCE_mean(input[-1], target[-1]).
    Computing only the last slice is numerically identical and skips the
    N-1 discarded iterations.
    """
    return _bce_mean_pallas(input_scale[-1], target_scale[-1])


if __name__ == "__main__":
    key = jax.random.PRNGKey(0)
    k1, k2, k3, k4 = jax.random.split(key, 4)

    # Main demo: small NCHW probability maps (sigmoid outputs), binary targets.
    N, C, H, W = 2, 4, 32, 32
    preds = jax.nn.sigmoid(jax.random.normal(k1, (N, C, H, W), dtype=jnp.float32))
    targets = jax.random.bernoulli(k2, 0.5, (N, C, H, W)).astype(jnp.float32)

    loss = bceloss_forward(preds, targets)
    jax.block_until_ready(loss)
    ref = _bce_mean_ref(preds[-1], targets[-1])
    assert jnp.allclose(loss, ref, rtol=1e-5, atol=1e-6), (loss, ref)

    # Second check: force small tiles so the multi-tile accumulation, the
    # two-way core split and the in-kernel ragged-tail mask are all exercised
    # (240 rows of 128 lanes, tile_rows=64 -> 4 tiles, last one partial).
    C2, H2, W2 = 5, 48, 128
    p2 = jax.nn.sigmoid(jax.random.normal(k3, (2, C2, H2, W2), dtype=jnp.float32))
    t2 = jax.random.bernoulli(k4, 0.5, (2, C2, H2, W2)).astype(jnp.float32)
    loss2 = _bce_mean_pallas(p2[-1], t2[-1], max_tile_rows=64)
    jax.block_until_ready(loss2)
    ref2 = _bce_mean_ref(p2[-1], t2[-1])
    assert jnp.allclose(loss2, ref2, rtol=1e-5, atol=1e-6), (loss2, ref2)

    print("KERNEL_OK")
</pallas_src>

<mosaic_0001>
module attributes {stable_mosaic.version = 11 : i64} {
  func.func @kernel(%arg0: i32, %arg1: i32, %arg2: memref<32x128xf32, #tpu.memory_space<vmem>>, %arg3: memref<32x128xf32, #tpu.memory_space<vmem>>, %arg4: memref<1x8x128xf32, #tpu.memory_space<vmem>>) attributes {dimension_semantics = [#tpu.dimension_semantics<parallel>, #tpu.dimension_semantics<arbitrary>], iteration_bounds = array<i64: 1, 1>, scalar_prefetch = 0 : i64, scratch_operands = 0 : i64, tpu.core_type = #tpu.core_type<tc>, window_params = [{transform_indices = @transform_0, window_bounds = array<i64: 32, 128>}, {transform_indices = @transform_1, window_bounds = array<i64: 32, 128>}, {transform_indices = @transform_2, window_bounds = array<i64: 1, 8, 128>}]} {
    %c0_i32 = arith.constant 0 : i32
    %0 = arith.cmpi eq, %arg1, %c0_i32 : i32
    %1 = arith.extui %0 : i1 to i32
    %c0_i32_0 = arith.constant 0 : i32
    %2 = arith.cmpi ne, %1, %c0_i32_0 : i32
    scf.if %2 {
      %cst_15 = arith.constant 0.000000e+00 : f32
      %26 = vector.broadcast %cst_15 : f32 to vector<1x8x128xf32>
      %c0_16 = arith.constant 0 : index
      %c0_17 = arith.constant 0 : index
      %c0_18 = arith.constant 0 : index
      %27 = vector.load %arg4[%c0_16, %c0_17, %c0_18] : memref<1x8x128xf32, #tpu.memory_space<vmem>>, vector<1x8x128xf32>
      tpu.vector_store %arg4[%c0_16, %c0_17, %c0_18], %26 {strides = array<i32>} : memref<1x8x128xf32, #tpu.memory_space<vmem>>, vector<1x8x128xf32>,
    } else {
    }
    %c0 = arith.constant 0 : index
    %c0_1 = arith.constant 0 : index
    %3 = vector.load %arg2[%c0, %c0_1] : memref<32x128xf32, #tpu.memory_space<vmem>>, vector<32x128xf32>
    %c0_2 = arith.constant 0 : index
    %c0_3 = arith.constant 0 : index
    %4 = vector.load %arg3[%c0_2, %c0_3] : memref<32x128xf32, #tpu.memory_space<vmem>>, vector<32x128xf32>
    %5 = math.log %3 : vector<32x128xf32>
    %cst = arith.constant -1.000000e+02 : f32
    %6 = vector.broadcast %cst : f32 to vector<32x128xf32>
    %7 = arith.maximumf %5, %6 : vector<32x128xf32>
    %cst_4 = arith.constant 1.000000e+00 : f32
    %8 = vector.broadcast %cst_4 : f32 to vector<32x128xf32>
    %9 = arith.subf %8, %3 : vector<32x128xf32>
    %10 = math.log %9 : vector<32x128xf32>
    %cst_5 = arith.constant -1.000000e+02 : f32
    %11 = vector.broadcast %cst_5 : f32 to vector<32x128xf32>
    %12 = arith.maximumf %10, %11 : vector<32x128xf32>
    %13 = arith.mulf %4, %7 : vector<32x128xf32>
    %cst_6 = arith.constant 1.000000e+00 : f32
    %14 = vector.broadcast %cst_6 : f32 to vector<32x128xf32>
    %15 = arith.subf %14, %4 : vector<32x128xf32>
    %16 = arith.mulf %15, %12 : vector<32x128xf32>
    %17 = arith.addf %13, %16 : vector<32x128xf32>
    %cst_7 = arith.constant 0.000000e+00 : f32
    %18 = vector.broadcast %cst_7 : f32 to vector<32x128xf32>
    %19 = arith.subf %18, %17 : vector<32x128xf32>
    %20 = vector.shape_cast %19 : vector<32x128xf32> to vector<4x8x128xf32>
    %cst_8 = arith.constant dense<0.000000e+00> : vector<8x128xf32>
    %21 = vector.multi_reduction <add>, %20, %cst_8 [0] : vector<4x8x128xf32> to vector<8x128xf32>
    %c0_9 = arith.constant 0 : index
    %c0_10 = arith.constant 0 : index
    %c0_11 = arith.constant 0 : index
    %22 = vector.load %arg4[%c0_9, %c0_10, %c0_11] : memref<1x8x128xf32, #tpu.memory_space<vmem>>, vector<1x8x128xf32>
    %23 = vector.shape_cast %21 : vector<8x128xf32> to vector<1x8x128xf32>
    %24 = arith.addf %22, %23 : vector<1x8x128xf32>
    %c0_12 = arith.constant 0 : index
    %c0_13 = arith.constant 0 : index
    %c0_14 = arith.constant 0 : index
    %25 = vector.load %arg4[%c0_12, %c0_13, %c0_14] : memref<1x8x128xf32, #tpu.memory_space<vmem>>, vector<1x8x128xf32>
    tpu.vector_store %arg4[%c0_12, %c0_13, %c0_14], %24 {strides = array<i32>} : memref<1x8x128xf32, #tpu.memory_space<vmem>>, vector<1x8x128xf32>,
    return
  }
  func.func @transform_0(%arg0: i32, %arg1: i32) -> (i32, i32) {
    %c1_i32 = arith.constant 1 : i32
    %0 = arith.muli %arg0, %c1_i32 : i32
    %1 = arith.addi %0, %arg1 : i32
    %c0_i32 = arith.constant 0 : i32
    %c0_i32_0 = arith.constant 0 : i32
    return %1, %c0_i32 : i32, i32
  }
  func.func @transform_1(%arg0: i32, %arg1: i32) -> (i32, i32) {
    %c1_i32 = arith.constant 1 : i32
    %0 = arith.muli %arg0, %c1_i32 : i32
    %1 = arith.addi %0, %arg1 : i32
    %c0_i32 = arith.constant 0 : i32
    %c0_i32_0 = arith.constant 0 : i32
    return %1, %c0_i32 : i32, i32
  }
  func.func @transform_2(%arg0: i32, %arg1: i32) -> (i32, i32, i32) {
    %c0_i32 = arith.constant 0 : i32
    %c0_i32_0 = arith.constant 0 : i32
    %c0_i32_1 = arith.constant 0 : i32
    return %arg0, %c0_i32, %c0_i32_0 : i32, i32, i32
  }
}

</mosaic_0001>

<bundles_post_ra>
// kernel: tpu_custom_call.1
= control target key start
LH: loop header
LB: loop body
LE: loop exit
PB: predicated region body
PF: predicated region fallthrough
CT: control target
= control target key end

     0   :  { %7 = vsyncpa [#allocation3], 0  ;;  %s270_s0 = inlined_call_operand.hbm [shape: f32[32,128], index: 0, kind: input, shape index: {}]   ;;  %s271_s1 = inlined_call_operand.hbm [shape: f32[32,128], index: 1, kind: input, shape index: {}]   ;;  %s272_s2 = inlined_call_operand.hbm [shape: f32[1,8,128], index: 2, kind: output, shape index: {}]  }
   0x1   :  { %8 = vsyncpa [#allocation6], 0 }
   0x2   :  { %9 = vsyncpa [#allocation4], 0  ;;  %s18_s11 = sshll.u32 %s270_s0, 4  ;;  %s241_s12 = smov [#allocation2]   ;;  %s19_s11 = int_to_ptr.hbm [resolvable:$true] %s18_s11 }
   0x3   :  { %s20_s13 = sshll.u32 %s241_s12, 4  ;;  %s35_s16 = sshll.u32 %s271_s1, 4  ;;  %s21_s13 = int_to_ptr.vmem [resolvable:$true] %s20_s13  ;;  %s36_s16 = int_to_ptr.hbm [resolvable:$true] %s35_s16 }
   0x4   :  { %s242_s17 = smov 128   ;;  %s243_s18 = smov 8  }
   0x5   :  { %26 = dma.hbm_to_vmem [thread:$0]  %s19_s11, 512, %s21_s13, [#allocation3], %s242_s17, %s242_s17, %s243_s18  }
   0x6   :  { %s244_s19 = smov [#allocation5]  }
   0x7   :  { %s37_s20 = sshll.u32 %s244_s19, 4  ;;  %s38_s20 = int_to_ptr.vmem [resolvable:$true] %s37_s20 }
   0x8   :  { %43 = dma.hbm_to_vmem [thread:$0]  %s36_s16, 512, %s38_s20, [#allocation6], %s242_s17, %s242_s17, %s243_s18  }
   0x9   :  { %235 = dma.done.wait [#allocation3], 512  }
   0xa   :  { %236 = vsyncadd [#allocation3], 4294966784 }
   0xb   :  { %237 = dma.done.wait [#allocation6], 512  }
   0xc   :  { %238 = vsyncadd [#allocation6], 4294966784  ;;  %v61_v0 = vld [vmem:[#allocation2] sm:$0xff]  ;;  %v62_v1 = vld [vmem:[#allocation2 + $0x8] sm:$0xff]  ;;  %s245_s0 = smov [#allocation7]   ;;  %s130_s23 = sshll.u32 %s272_s2, 4  ;;  %s131_s23 = int_to_ptr.hbm [resolvable:$true] %s130_s23 }
   0xd   :  { %v63_v2 = vld [vmem:[#allocation2 + $0x10] sm:$0xff]  ;;  %v64_v3 = vld [vmem:[#allocation2 + $0x18] sm:$0xff]  ;;  %147 = vlog2.f32 %v61_v0  ;;  %v81_v4 = vsub.f32 1.0, %v61_v0  ;;  %v82_v5 = vsub.f32 1.0, %v62_v1  ;;  %v65_v12 = vld [vmem:[#allocation5] sm:$0xff]  ;;  %s128_s1 = sshll.u32 %s245_s0, 4  ;;  %s129_s1 = int_to_ptr.vmem [resolvable:$true] %s128_s1 }
   0xe   :  { %149 = vlog2.f32 %v62_v1  ;;  %v83_v6 = vsub.f32 1.0, %v63_v2  ;;  %v84_v7 = vsub.f32 1.0, %v64_v3  ;;  %v66_v15 = vld [vmem:[#allocation5 + $0x8] sm:$0xff]  ;;  %v67_v19 = vld [vmem:[#allocation5 + $0x10] sm:$0xff]  ;;  %v68_v23 = vld [vmem:[#allocation5 + $0x18] sm:$0xff]  ;;  %v101_v26 = vsub.f32 1.0, %v65_v12 }
   0xf   :  { %151 = vlog2.f32 %v63_v2  ;;  %v102_v30 = vsub.f32 1.0, %v66_v15  ;;  %v103_v35 = vsub.f32 1.0, %v67_v19  ;;  %v104_v39 = vsub.f32 1.0, %v68_v23 }
  0x10   :  { %153 = vlog2.f32 %v64_v3 }
  0x11   :  { %155 = vlog2.f32 %v81_v4 }
  0x12   :  { %157 = vlog2.f32 %v82_v5 }
  0x13   :  { %v148_v8 = vpop.eup %147  ;;  %159 = vlog2.f32 %v83_v6 }
  0x14   :  { %v150_v9 = vpop.eup %149  ;;  %v70_v10 = vmul.f32 0.6931472, %v148_v8  ;;  %161 = vlog2.f32 %v84_v7 }
  0x15   :  { %v152_v11 = vpop.eup %151  ;;  %v72_v13 = vmul.f32 0.6931472, %v150_v9 }
  0x16   :  { %v154_v14 = vpop.eup %153  ;;  %v74_v16 = vmul.f32 0.6931472, %v152_v11  ;;  %v77_v17 = vmax.f32 %v70_v10, -100.0 }
  0x17   :  { %v156_v18 = vpop.eup %155  ;;  %v76_v20 = vmul.f32 0.6931472, %v154_v14  ;;  %v78_v21 = vmax.f32 %v72_v13, -100.0 }
  0x18   :  { %v158_v22 = vpop.eup %157  ;;  %v79_v24 = vmax.f32 %v74_v16, -100.0  ;;  %v86_v25 = vmul.f32 0.6931472, %v156_v18  ;;  %v97_v34 = vmul.f32 %v77_v17, %v65_v12 }
  0x19   :  { %v160_v27 = vpop.eup %159  ;;  %v80_v28 = vmax.f32 %v76_v20, -100.0  ;;  %v88_v29 = vmul.f32 0.6931472, %v158_v22  ;;  %v98_v38 = vmul.f32 %v78_v21, %v66_v15 }
  0x1a   :  { %v162_v31 = vpop.eup %161  ;;  %v90_v32 = vmul.f32 0.6931472, %v160_v27  ;;  %v93_v33 = vmax.f32 %v86_v25, -100.0  ;;  %v99_v41 = vmul.f32 %v79_v24, %v67_v19 }
  0x1b   :  { %v92_v36 = vmul.f32 0.6931472, %v162_v31  ;;  %v94_v37 = vmax.f32 %v88_v29, -100.0  ;;  %v100_v44 = vmul.f32 %v80_v28, %v68_v23 }
  0x1c   :  { %v95_v40 = vmax.f32 %v90_v32, -100.0  ;;  %v105_v42 = vmul.f32 %v101_v26, %v93_v33 }
  0x1d   :  { %v96_v43 = vmax.f32 %v92_v36, -100.0  ;;  %v106_v45 = vmul.f32 %v102_v30, %v94_v37 }
  0x1e   :  { %v107_v46 = vmul.f32 %v103_v35, %v95_v40  ;;  %v109_v47 = vadd.f32 %v105_v42, %v97_v34 }
  0x1f   :  { %v108_v48 = vmul.f32 %v104_v39, %v96_v43  ;;  %v110_v49 = vadd.f32 %v106_v45, %v98_v38 }
  0x20   :  { %v111_v50 = vadd.f32 %v107_v46, %v99_v41  ;;  %v113_v51 = vsub.f32 0.0, %v109_v47 }
  0x21   :  { %v112_v52 = vadd.f32 %v108_v48, %v100_v44  ;;  %v114_v53 = vsub.f32 0.0, %v110_v49 }
  0x22   :  { %v115_v54 = vsub.f32 0.0, %v111_v50 }
  0x23   :  { %v116_v55 = vsub.f32 0.0, %v112_v52  ;;  %v117_v56 = vadd.f32 %v114_v53, %v113_v51 }
  0x25   :  { %v118_v57 = vadd.f32 %v117_v56, %v115_v54 }
  0x27   :  { %v119_v58 = vadd.f32 %v118_v57, %v116_v55 }
  0x29   :  { %122 = vst [vmem:[#allocation7] sm:$0xff] %v119_v58 }
  0x2a   :  { %133 = dma.vmem_to_hbm [thread:$0]  %s129_s1, 128, %s131_s23, [#allocation4]  }
  0x2b   :  { %239 = dma.done.wait [#allocation4], 128  }
  0x2c   :  { %240 = vsyncadd [#allocation4], 4294967168 }
  0x2d   :  { %138 = vsyncpa [#allocation3], 1 }
  0x2e   :  { %139 = vsyncpa [#allocation6], 1 }
  0x2f   :  { %140 = vsyncpa [#allocation4], 1 }

</bundles_post_ra>
